<compile_context>
chip_gen: v7x
topology: tpu7x:2x2x1
jax: 0.10.0
libtpu: 0.0.40
codegen_flags: <defaults>
</compile_context>

<pallas_src>
import functools

import jax
import jax.numpy as jnp
from jax.experimental import pallas as pl
from jax.experimental.pallas import tpu as pltpu


def _nll_kernel(y_ref, p_ref, conf_ref, av_ref, out_ref, *,
                modes, t2, batch_size, tile_rows):
    """One batch tile.

    y_ref    : (TB, T2)        ground truth, x/y coords fused into the lane axis
    p_ref    : (TB, M*T2)      predictions, modes AND coords fused into lanes
    conf_ref : (TB, M)         mode confidences (logits)
    av_ref   : (TB, T2)        availability repeated over the coord axis (16-bit)
    out_ref  : (1, 1, 1)       per-tile partial sum of the negative log-likelihood
    """
    y = y_ref[...].astype(jnp.float32)                 # (TB, T2)
    av = av_ref[...].astype(jnp.float32)               # (TB, T2)
    avsq = av * av                                     # ((y-p)*av)^2 == (y-p)^2 * av^2
    conf = conf_ref[...].astype(jnp.float32)           # (TB, M)

    # Per-mode weighted squared error; modes unrolled statically (M is tiny).
    # Each term is one fused sub/mul/mul chain feeding a lane reduction (XLU),
    # no whole-tile f32 temporaries are kept around between modes.
    cols = []
    for m in range(modes):
        d = p_ref[:, m * t2:(m + 1) * t2].astype(jnp.float32) - y      # (TB, T2)
        cols.append(jnp.sum(d * d * avsq, axis=-1, keepdims=True))     # (TB, 1)
    err = jnp.concatenate(cols, axis=-1)               # (TB, M)

    # neg_ll = logsumexp(conf) - logsumexp(conf - 0.5*err)
    #        = -logsumexp(log_softmax(conf) - 0.5*err)   (same math as the module)
    a = conf - 0.5 * err
    cmax = jnp.max(conf, axis=-1, keepdims=True)
    amax = jnp.max(a, axis=-1, keepdims=True)
    lse_c = jnp.log(jnp.sum(jnp.exp(conf - cmax), axis=-1, keepdims=True)) + cmax
    lse_a = jnp.log(jnp.sum(jnp.exp(a - amax), axis=-1, keepdims=True)) + amax
    neg_ll = lse_c - lse_a                              # (TB, 1)

    # Ragged last tile: padded rows may hold garbage (possibly Inf/NaN after the
    # exp/log chain) but every reduction above is strictly per-row, so the
    # select below discards them before anything crosses rows.  Do NOT move a
    # cross-row reduction above this point.
    row = (jax.lax.broadcasted_iota(jnp.int32, neg_ll.shape, 0)
           + pl.program_id(0) * tile_rows)
    neg_ll = jnp.where(row < batch_size, neg_ll, 0.0)

    out_ref[...] = jnp.sum(neg_ll).reshape(1, 1, 1)


def _round_up(x, m):
    return -(-x // m) * m


def _block_row_bytes(modes, t2, pred_itemsize, y_itemsize, av_itemsize):
    """Padded VMEM bytes of the input blocks per batch row."""
    lanes = lambda n: _round_up(n, 128)
    return (lanes(modes * t2) * pred_itemsize        # y_pred (fused modes/coords)
            + lanes(t2) * y_itemsize                 # y
            + lanes(t2) * av_itemsize                # expanded availability
            + lanes(modes) * 4)                      # confidences


def _choose_tile(bs, row_bytes, max_tile=None):
    """Pick a batch tile: multiple of 8 when gridded, full bs for one tile."""
    if max_tile is not None:
        tb = min(bs, max_tile)
        if tb < bs:
            tb = max(8, (tb // 8) * 8)
        return tb
    # ~12 MiB of double-buffered input blocks per pipeline stage (review item 2).
    budget = 12 * 1024 * 1024
    tb = max(8, min(2048, (budget // (2 * row_bytes)) // 8 * 8))
    if bs <= tb:
        if bs > 1024:
            # Keep the grid >= 2 so v7x megacore has work on both TensorCores.
            return max(8, _round_up((bs + 1) // 2, 8))
        return bs
    return tb


def _vmem_limit_bytes(tb, row_bytes):
    """Scoped-VMEM request derived from the double-buffered block footprint.

    Capped at 40 MiB so it is always safe on v7x (64 MiB physical / TC) while
    still giving the pipeline plenty of headroom on v5e/v6e (128 MiB).
    """
    blocks_db = 2 * tb * row_bytes                    # 2x-buffered input blocks
    return int(min(40 << 20, max(16 << 20, 2 * blocks_db + (8 << 20))))


def neg_multi_log_likelihood_batch(y, y_pred, confidences, avails, *, tile_batch=None):
    """y:(bs,time,2) y_pred:(bs,modes,time,2) confidences:(bs,modes) avails:(bs,time)"""
    bs, time, ncoord = y.shape
    _, modes, _, _ = y_pred.shape
    t2 = ncoord * time

    # Metadata-only reshapes: coords fused into time for y, coords AND modes
    # fused into the lane axis for y_pred (both arrays are contiguous).
    y2 = jnp.reshape(y, (bs, t2))
    p2 = jnp.reshape(y_pred, (bs, modes * t2))

    # Expanded availability, shipped in 16 bits (it is a 0/1 mask, so bf16 is
    # exact); no f32 (bs, t2) copy is materialized in HBM anymore.
    av2 = jnp.reshape(jnp.broadcast_to(avails[:, :, None], (bs, time, ncoord)), (bs, t2))
    if av2.dtype.itemsize > 2:
        av2 = av2.astype(jnp.bfloat16)

    row_bytes = _block_row_bytes(modes, t2,
                                 y_pred.dtype.itemsize,
                                 y.dtype.itemsize,
                                 av2.dtype.itemsize)
    tb = _choose_tile(bs, row_bytes, tile_batch)
    grid = pl.cdiv(bs, tb)

    kernel = functools.partial(_nll_kernel, modes=modes, t2=t2,
                               batch_size=bs, tile_rows=tb)

    partial_sums = pl.pallas_call(
        kernel,
        out_shape=jax.ShapeDtypeStruct((grid, 1, 1), jnp.float32),
        grid=(grid,),
        in_specs=[
            pl.BlockSpec((tb, t2), lambda i: (i, 0)),             # y
            pl.BlockSpec((tb, modes * t2), lambda i: (i, 0)),     # y_pred (fused)
            pl.BlockSpec((tb, modes), lambda i: (i, 0)),          # confidences
            pl.BlockSpec((tb, t2), lambda i: (i, 0)),             # avails (expanded)
        ],
        out_specs=pl.BlockSpec((1, 1, 1), lambda i: (i, 0, 0)),
        compiler_params=pltpu.CompilerParams(
            dimension_semantics=("parallel",),
            vmem_limit_bytes=_vmem_limit_bytes(tb, row_bytes),
        ),
    )(y2, p2, confidences, av2)

    # Tiny epilogue: finish the mean over the FULL batch in the wrapper.
    return jnp.sum(partial_sums) / bs


def _reference(y, y_pred, confidences, avails):
    # Pure-JAX reference mirroring the PyTorch module.
    y = y[:, None]                                    # (bs,1,time,2)
    av = avails[:, None, :, None]                     # (bs,1,time,1)
    error = jnp.sum(((y - y_pred) * av) ** 2, axis=-1)             # (bs,modes,time)
    error = jax.nn.log_softmax(confidences, axis=1) - 0.5 * jnp.sum(error, axis=-1)
    error = -jax.scipy.special.logsumexp(error, axis=-1, keepdims=True)
    return jnp.mean(error)


def _make_inputs(key, bs, modes, time):
    k1, k2, k3, k4 = jax.random.split(key, 4)
    y = jax.random.normal(k1, (bs, time, 2), dtype=jnp.float32)
    y_pred = jax.random.normal(k2, (bs, modes, time, 2), dtype=jnp.float32)
    confidences = jax.random.normal(k3, (bs, modes), dtype=jnp.float32)
    avails = (jax.random.uniform(k4, (bs, time)) > 0.3).astype(jnp.float32)
    return y, y_pred, confidences, avails


if __name__ == "__main__":
    key = jax.random.PRNGKey(0)
    k_a, k_b = jax.random.split(key)

    # Case 1: small batch, single tile (grid=1 path).
    y, y_pred, conf, av = _make_inputs(k_a, bs=2, modes=3, time=8)
    out1 = jax.block_until_ready(neg_multi_log_likelihood_batch(y, y_pred, conf, av))
    ref1 = _reference(y, y_pred, conf, av)
    assert jnp.allclose(out1, ref1, rtol=1e-5, atol=1e-5), (out1, ref1)

    # Case 2: gridded batch with a ragged last tile (exercises masking + pipeline).
    y, y_pred, conf, av = _make_inputs(k_b, bs=20, modes=3, time=8)
    out2 = jax.block_until_ready(
        neg_multi_log_likelihood_batch(y, y_pred, conf, av, tile_batch=8))
    ref2 = _reference(y, y_pred, conf, av)
    assert jnp.allclose(out2, ref2, rtol=1e-5, atol=1e-5), (out2, ref2)

    print("KERNEL_OK")
</pallas_src>

<mosaic_0001>
module attributes {stable_mosaic.version = 11 : i64} {
  func.func @_nll_kernel(%arg0: i32, %arg1: memref<2x16xf32, #tpu.memory_space<vmem>>, %arg2: memref<2x48xf32, #tpu.memory_space<vmem>>, %arg3: memref<2x3xf32, #tpu.memory_space<vmem>>, %arg4: memref<2x16xbf16, #tpu.memory_space<vmem>>, %arg5: memref<1x1x1xf32, #tpu.memory_space<vmem>>) attributes {dimension_semantics = [#tpu.dimension_semantics<parallel>], iteration_bounds = array<i64: 1>, scalar_prefetch = 0 : i64, scratch_operands = 0 : i64, tpu.core_type = #tpu.core_type<tc>, window_params = [{transform_indices = @transform_0, window_bounds = array<i64: 2, 16>}, {transform_indices = @transform_1, window_bounds = array<i64: 2, 48>}, {transform_indices = @transform_2, window_bounds = array<i64: 2, 3>}, {transform_indices = @transform_3, window_bounds = array<i64: 2, 16>}, {transform_indices = @transform_4, window_bounds = array<i64: 1, 1, 1>}]} {
    %c0 = arith.constant 0 : index
    %c0_0 = arith.constant 0 : index
    %0 = vector.load %arg1[%c0, %c0_0] : memref<2x16xf32, #tpu.memory_space<vmem>>, vector<2x16xf32>
    %c0_1 = arith.constant 0 : index
    %c0_2 = arith.constant 0 : index
    %1 = vector.load %arg4[%c0_1, %c0_2] : memref<2x16xbf16, #tpu.memory_space<vmem>>, vector<2x16xbf16>
    %2 = arith.extf %1 : vector<2x16xbf16> to vector<2x16xf32>
    %3 = arith.mulf %2, %2 : vector<2x16xf32>
    %c0_3 = arith.constant 0 : index
    %c0_4 = arith.constant 0 : index
    %4 = vector.load %arg3[%c0_3, %c0_4] : memref<2x3xf32, #tpu.memory_space<vmem>>, vector<2x3xf32>
    %c0_5 = arith.constant 0 : index
    %c0_6 = arith.constant 0 : index
    %5 = vector.load %arg2[%c0_5, %c0_6] : memref<2x48xf32, #tpu.memory_space<vmem>>, vector<2x16xf32>
    %6 = arith.subf %5, %0 : vector<2x16xf32>
    %7 = arith.mulf %6, %6 : vector<2x16xf32>
    %8 = arith.mulf %7, %3 : vector<2x16xf32>
    %cst = arith.constant dense<0.000000e+00> : vector<2xf32>
    %9 = vector.multi_reduction <add>, %8, %cst [1] : vector<2x16xf32> to vector<2xf32>
    %10 = vector.shape_cast %9 : vector<2xf32> to vector<2x1xf32>
    %c0_7 = arith.constant 0 : index
    %c16 = arith.constant 16 : index
    %11 = vector.load %arg2[%c0_7, %c16] : memref<2x48xf32, #tpu.memory_space<vmem>>, vector<2x16xf32>
    %12 = arith.subf %11, %0 : vector<2x16xf32>
    %13 = arith.mulf %12, %12 : vector<2x16xf32>
    %14 = arith.mulf %13, %3 : vector<2x16xf32>
    %cst_8 = arith.constant dense<0.000000e+00> : vector<2xf32>
    %15 = vector.multi_reduction <add>, %14, %cst_8 [1] : vector<2x16xf32> to vector<2xf32>
    %16 = vector.shape_cast %15 : vector<2xf32> to vector<2x1xf32>
    %c0_9 = arith.constant 0 : index
    %c32 = arith.constant 32 : index
    %17 = vector.load %arg2[%c0_9, %c32] : memref<2x48xf32, #tpu.memory_space<vmem>>, vector<2x16xf32>
    %18 = arith.subf %17, %0 : vector<2x16xf32>
    %19 = arith.mulf %18, %18 : vector<2x16xf32>
    %20 = arith.mulf %19, %3 : vector<2x16xf32>
    %cst_10 = arith.constant dense<0.000000e+00> : vector<2xf32>
    %21 = vector.multi_reduction <add>, %20, %cst_10 [1] : vector<2x16xf32> to vector<2xf32>
    %22 = vector.shape_cast %21 : vector<2xf32> to vector<2x1xf32>
    %23 = tpu.concatenate %10, %16, %22 in 1 : vector<2x1xf32>, vector<2x1xf32>, vector<2x1xf32> -> vector<2x3xf32>
    %cst_11 = arith.constant 5.000000e-01 : f32
    %24 = vector.broadcast %cst_11 : f32 to vector<2x3xf32>
    %25 = arith.mulf %24, %23 : vector<2x3xf32>
    %26 = arith.subf %4, %25 : vector<2x3xf32>
    %cst_12 = arith.constant dense<0xFF800000> : vector<2xf32>
    %27 = vector.multi_reduction <maximumf>, %4, %cst_12 [1] : vector<2x3xf32> to vector<2xf32>
    %28 = vector.shape_cast %27 : vector<2xf32> to vector<2x1xf32>
    %cst_13 = arith.constant dense<0xFF800000> : vector<2xf32>
    %29 = vector.multi_reduction <maximumf>, %26, %cst_13 [1] : vector<2x3xf32> to vector<2xf32>
    %30 = vector.shape_cast %29 : vector<2xf32> to vector<2x1xf32>
    %31 = vector.broadcast %28 : vector<2x1xf32> to vector<2x3xf32>
    %32 = arith.subf %4, %31 : vector<2x3xf32>
    %33 = math.exp %32 : vector<2x3xf32>
    %cst_14 = arith.constant dense<0.000000e+00> : vector<2xf32>
    %34 = vector.multi_reduction <add>, %33, %cst_14 [1] : vector<2x3xf32> to vector<2xf32>
    %35 = vector.shape_cast %34 : vector<2xf32> to vector<2x1xf32>
    %36 = math.log %35 : vector<2x1xf32>
    %37 = arith.addf %36, %28 : vector<2x1xf32>
    %38 = vector.broadcast %30 : vector<2x1xf32> to vector<2x3xf32>
    %39 = arith.subf %26, %38 : vector<2x3xf32>
    %40 = math.exp %39 : vector<2x3xf32>
    %cst_15 = arith.constant dense<0.000000e+00> : vector<2xf32>
    %41 = vector.multi_reduction <add>, %40, %cst_15 [1] : vector<2x3xf32> to vector<2xf32>
    %42 = vector.shape_cast %41 : vector<2xf32> to vector<2x1xf32>
    %43 = math.log %42 : vector<2x1xf32>
    %44 = arith.addf %43, %30 : vector<2x1xf32>
    %45 = arith.subf %37, %44 : vector<2x1xf32>
    %46 = tpu.iota {dimensions = array<i32: 0>} : vector<2x1xi32>
    %c2_i32 = arith.constant 2 : i32
    %47 = arith.muli %arg0, %c2_i32 : i32
    %48 = vector.broadcast %47 : i32 to vector<2x1xi32>
    %49 = arith.addi %46, %48 : vector<2x1xi32>
    %c2_i32_16 = arith.constant 2 : i32
    %50 = vector.broadcast %c2_i32_16 : i32 to vector<2x1xi32>
    %51 = arith.cmpi slt, %49, %50 : vector<2x1xi32>
    %cst_17 = arith.constant 0.000000e+00 : f32
    %52 = vector.broadcast %cst_17 : f32 to vector<2x1xf32>
    %53 = arith.select %51, %45, %52 : vector<2x1xi1>, vector<2x1xf32>
    %54 = vector.shape_cast %53 : vector<2x1xf32> to vector<1x2x1xf32>
    %cst_18 = arith.constant dense<0.000000e+00> : vector<1xf32>
    %55 = vector.multi_reduction <add>, %54, %cst_18 [1, 2] : vector<1x2x1xf32> to vector<1xf32>
    %56 = vector.shape_cast %55 : vector<1xf32> to vector<1x1x1xf32>
    %57 = vector.extract %56[0, 0, 0] : f32 from vector<1x1x1xf32>
    %58 = vector.broadcast %57 : f32 to vector<1x1x1xf32>
    %c0_19 = arith.constant 0 : index
    %c0_20 = arith.constant 0 : index
    %c0_21 = arith.constant 0 : index
    %59 = vector.load %arg5[%c0_19, %c0_20, %c0_21] : memref<1x1x1xf32, #tpu.memory_space<vmem>>, vector<1x1x1xf32>
    tpu.vector_store %arg5[%c0_19, %c0_20, %c0_21], %58 {strides = array<i32>} : memref<1x1x1xf32, #tpu.memory_space<vmem>>, vector<1x1x1xf32>,
    return
  }
  func.func @transform_0(%arg0: i32) -> (i32, i32) {
    %c0_i32 = arith.constant 0 : i32
    %c0_i32_0 = arith.constant 0 : i32
    return %arg0, %c0_i32 : i32, i32
  }
  func.func @transform_1(%arg0: i32) -> (i32, i32) {
    %c0_i32 = arith.constant 0 : i32
    %c0_i32_0 = arith.constant 0 : i32
    return %arg0, %c0_i32 : i32, i32
  }
  func.func @transform_2(%arg0: i32) -> (i32, i32) {
    %c0_i32 = arith.constant 0 : i32
    %c0_i32_0 = arith.constant 0 : i32
    return %arg0, %c0_i32 : i32, i32
  }
  func.func @transform_3(%arg0: i32) -> (i32, i32) {
    %c0_i32 = arith.constant 0 : i32
    %c0_i32_0 = arith.constant 0 : i32
    return %arg0, %c0_i32 : i32, i32
  }
  func.func @transform_4(%arg0: i32) -> (i32, i32, i32) {
    %c0_i32 = arith.constant 0 : i32
    %c0_i32_0 = arith.constant 0 : i32
    %c0_i32_1 = arith.constant 0 : i32
    return %arg0, %c0_i32, %c0_i32_0 : i32, i32, i32
  }
}

</mosaic_0001>

<bundles_post_ra>
// kernel: tpu_custom_call.1
= control target key start
LH: loop header
LB: loop body
LE: loop exit
PB: predicated region body
PF: predicated region fallthrough
CT: control target
= control target key end

     0   :  { %9 = vsyncpa [#allocation3], 0  ;;  %s290_s0 = inlined_call_operand.hbm [shape: f32[2,16], index: 0, kind: input, shape index: {}]   ;;  %s291_s1 = inlined_call_operand.vmem [shape: f32[2,48], index: 1, kind: input, shape index: {}]   ;;  %s292_s2 = inlined_call_operand.vmem [shape: f32[2,3], index: 2, kind: input, shape index: {}]   ;;  %s293_s3 = inlined_call_operand.vmem [shape: bf16[2,16], index: 3, kind: input, shape index: {}]   ;;  %s294_s4 = inlined_call_operand.hbm [shape: f32[1,1,1], index: 4, kind: output, shape index: {}]  }
   0x1   :  { %10 = vsyncpa [#allocation4], 0  ;;  %s217_s15 = smov [#allocation2]   ;;  %s169_s19 = scalar_lea.hbm %s290_s0, 32 }
   0x2   :  { %s17_s16 = sshll.u32 %s217_s15, 4  ;;  %p170_p0 = scmp.ne.s32.totalorder %s290_s0, %s169_s19  ;;  %s18_s16 = int_to_ptr.vmem [resolvable:$true] %s17_s16 }
   0x3   :  { %p173_p1 = scmp.lt.u32.totalorder %s169_s19, %s290_s0 }
   0x5   :  { %p175_p2 = pnand %p173_p1, %p170_p0 }
   0x7   :  { %178 = shalt.err (!%p175_p2)
}
   0x8   :  { %s179_s24 = scalar_lea.vmem %s18_s16, 32  ;;  %p184_p4 = scmp.lt.s32.totalorder %s18_s16, %s18_s16 }
   0x9   :  { %p180_p3 = scmp.ne.s32.totalorder %s18_s16, %s179_s24  ;;  %p185_p5 = scmp.lt.s32.totalorder %s179_s24, %s179_s24 }
   0xb   :  { %p186_p6 = por %p185_p5, %p184_p4 }
   0xd   :  { %p187_p7 = pnand %p186_p6, %p180_p3 }
   0xf   :  { %190 = shalt.err (!%p187_p7)
}
  0x10   :  { %20 = dma.hbm_to_vmem [thread:$0]  %s290_s0, 32, %s18_s16, [#allocation3]  }
  0x11   :  { %213 = dma.done.wait [#allocation3], 32  }
  0x12   :  { %214 = vsyncadd [#allocation3], 4294967264  ;;  %v53_v0 = vlaneseq  ;;  %v218_v1 = vmov 1983009808   ;;  %v30_v5 = vld [vmem:[#allocation2] sm:$0x3] }
  0x13   :  { %v51_v2 = vunpack.c.l.s4 %v218_v1  ;;  %v31_v6 = vld [vmem:[%s293_s3] sm:$0x1]  ;;  %s219_s29 = smov 16   ;;  %s220_s0 = smov 32   ;;  %vm39_vm0 = vcmask 123904   ;;  %vm90_vm1 = vcmask 17408  }
  0x14   :  { %v261_v4 = vshrl.u32 %v53_v0, 7  ;;  %44 = vrot.lane.b32.xlu0 %v30_v5, %s219_s29  ;;  %v32_v7 = vunpack.c.l.bf16 %v31_v6  ;;  %v35_v11 = vld [vmem:[%s291_s1] sm:$0x3]  ;;  %s221_s3 = smov 112   ;;  %s222_s6 = smov 96   ;;  %vm84_vm2 = vcmask 7168  }
  0x15   :  { %v52_v3 = vunpack.c.0.s8 %v51_v2  ;;  %v36_v22 = vsub.f32 %v35_v11, %v30_v5  ;;  %v34_v29 = vld [vmem:[%s292_s2] sm:$0x3]  ;;  %vm86_vm3 = vcmask 15360   ;;  %vm123_vm5 = vcmask 1024   ;;  %s223_s2 = smov [#allocation5]  }
  0x16   :  { %v33_v9 = vmul.f32 %v32_v7, %v32_v7  ;;  %v91_v31 = vsel %vm90_vm1, %v34_v29, -inf  ;;  %vm121_vm4 = vcmp.lt.s32.totalorder %v261_v4, 2  ;;  %s143_s8 = sshll.u32 %s223_s2, 4  ;;  %vm135_vm6 = vcmask 0   ;;  %s144_s8 = int_to_ptr.vmem [resolvable:$true] %s143_s8 }
  0x17   :  { %v55_v8 = vsub.s32 %v52_v3, %v261_v4  ;;  %v37_v23 = vmul.f32 %v36_v22, %v36_v22  ;;  %s191_s10 = scalar_lea.vmem %s144_s8, 16  ;;  %s195_s11 = scalar_lea.vmem %s144_s8, 32 }
  0x18   :  { %68 = vrot.lane.b32.xlu0 %v30_v5, %s220_s0  ;;  %p192_p8 = scmp.ne.s32.totalorder %s144_s8, %s191_s10  ;;  %p196_p9 = scmp.lt.s32.totalorder %s144_s8, %s144_s8 }
  0x19   :  { %v56_v10 = vrot.slane %v33_v9, %v55_v8  ;;  %v38_v24 = vmul.f32 %v37_v23, %v33_v9  ;;  %p197_p10 = scmp.lt.s32.totalorder %s195_s11, %s191_s10 }
  0x1b   :  { %57 = vrot.lane.b32.xlu1 %v56_v10, %s219_s29  ;;  %v40_v25 = vsel %vm39_vm0, %v38_v24, 0.0  ;;  %p198_p11 = por %p197_p10, %p196_p9 }
  0x1d   :  { %p199_p12 = pnand %p198_p11, %p192_p8 }
  0x1f   :  { %73 = vrot.lane.b32.xlu1 %v56_v10, %s220_s0 }
  0x86   :  { %v45_v12 = vpop.permute.xlu0 %44 }
  0x87   :  { %v47_v13 = vsub.f32 %v35_v11, %v45_v12 }
  0x89   :  { %v48_v14 = vmul.f32 %v47_v13, %v47_v13 }
  0x8a   :  { %v69_v15 = vpop.permute.xlu0 %68 }
  0x8b   :  { %v71_v16 = vsub.f32 %v35_v11, %v69_v15 }
  0x8d   :  { %v58_v17 = vpop.permute.xlu1 %57  ;;  %v72_v19 = vmul.f32 %v71_v16, %v71_v16 }
  0x8e   :  { %v60_v18 = vmul.f32 %v58_v17, %v48_v14 }
  0x90   :  { %62 = vrot.lane.b32.xlu0 %v60_v18, %s221_s3 }
  0x91   :  { %v74_v20 = vpop.permute.xlu1 %73 }
  0x92   :  { %v76_v21 = vmul.f32 %v74_v20, %v72_v19 }
  0x94   :  { %78 = vrot.lane.b32.xlu1 %v76_v21, %s222_s6 }
  0xaf   :  { %41 = vadd.xlane.f32.xlu0 %v40_v25 }
 0x102   :  { %v63_v26 = vpop.permute.xlu0 %62 }
 0x103   :  { %v65_v27 = vsel %vm39_vm0, %v63_v26, 0.0 }
 0x104   :  { %66 = vadd.xlane.f32.xlu1 %v65_v27 }
 0x106   :  { %v79_v28 = vpop.permute.xlu1 %78 }
 0x107   :  { %v81_v30 = vsel %vm39_vm0, %v79_v28, 0.0 }
 0x108   :  { %82 = vadd.xlane.f32.xlu0 %v81_v30 }
 0x10c   :  { %92 = vmax.xlane.f32.xlu0 %v91_v31 }
 0x13c   :  { %v42_v32 = vpop.xlane.xlu0 %41 }
 0x191   :  { %v67_v33 = vpop.xlane.xlu1 %66 }
 0x192   :  { %v85_v34 = vsel %vm84_vm2, %v42_v32, %v67_v33 }
 0x195   :  { %v83_v35 = vpop.xlane.xlu0 %82 }
 0x196   :  { %v87_v36 = vsel %vm86_vm3, %v85_v34, %v83_v35 }
 0x197   :  { %v88_v37 = vmul.f32 0.5, %v87_v36 }
 0x199   :  { %v93_v38 = vpop.xlane.xlu0 %92  ;;  %v89_v39 = vsub.f32 %v34_v29, %v88_v37 }
 0x19a   :  { %v97_v40 = vsub.f32 %v34_v29, %v93_v38 }
 0x19b   :  { %v94_v41 = vsel %vm90_vm1, %v89_v39, -inf }
 0x19c   :  { %v98_v42 = vmul.f32 1.442695, %v97_v40  ;;  %95 = vmax.xlane.f32.xlu1 %v94_v41 }
 0x19e   :  { %161 = vpow2.f32 %v98_v42 }
 0x1a8   :  { %v162_v43 = vpop.eup %161 }
 0x1a9   :  { %v100_v44 = vsel %vm90_vm1, %v162_v43, 0.0 }
 0x1aa   :  { %101 = vadd.xlane.f32.xlu0 %v100_v44 }
 0x229   :  { %v96_v45 = vpop.xlane.xlu1 %95 }
 0x22a   :  { %v106_v46 = vsub.f32 %v89_v39, %v96_v45 }
 0x22c   :  { %v107_v47 = vmul.f32 1.442695, %v106_v46 }
 0x22e   :  { %163 = vpow2.f32 %v107_v47 }
 0x237   :  { %v102_v50 = vpop.xlane.xlu0 %101 }
 0x238   :  { %v164_v48 = vpop.eup %163  ;;  %165 = vlog2.f32 %v102_v50 }
 0x239   :  { %v109_v49 = vsel %vm90_vm1, %v164_v48, 0.0 }
 0x23a   :  { %110 = vadd.xlane.f32.xlu1 %v109_v49 }
 0x242   :  { %v166_v52 = vpop.eup %165 }
 0x243   :  { %v104_v53 = vmul.f32 0.6931472, %v166_v52 }
 0x245   :  { %v105_v56 = vadd.f32 %v104_v53, %v93_v38 }
 0x2c7   :  { %v111_v51 = vpop.xlane.xlu1 %110 }
 0x2c8   :  { %167 = vlog2.f32 %v111_v51 }
 0x2d2   :  { %v168_v54 = vpop.eup %167 }
 0x2d3   :  { %v113_v55 = vmul.f32 0.6931472, %v168_v54 }
 0x2d5   :  { %v114_v57 = vadd.f32 %v113_v55, %v96_v45 }
 0x2d7   :  { %v115_v58 = vsub.f32 %v105_v56, %v114_v57 }
 0x2d9   :  { %v122_v59 = vsel %vm121_vm4, %v115_v58, 0.0 }
 0x2da   :  { %v124_v60 = vsel %vm123_vm5, %v122_v59, 0.0 }
 0x2db   :  { %125 = vadd.xlane.f32.xlu0 %v124_v60 }
 0x368   :  { %v126_v61 = vpop.xlane.xlu0 %125 }
 0x369   :  { %v127_v62 = vrot.slane %v126_v61, 4 }
 0x36b   :  { %v128_v63 = vadd.f32 %v127_v62, %v126_v61 }
 0x36d   :  { %v129_v0 = vrot.slane %v128_v63, 2 }
 0x36f   :  { %v130_v1 = vadd.f32 %v129_v0, %v128_v63 }
 0x371   :  { %v131_v2 = vrot.slane %v130_v1, 1 }
 0x373   :  { %v132_v3 = vadd.f32 %v131_v2, %v130_v1 }
 0x375   :  { %152 = vpush %v132_v3 }
 0x3a6   :  { %s153_s9 = spop %152 }
 0x3a7   :  { %v134_v5 = vstv %s153_s9 }
 0x3a8   :  { %136 = vst.msk [vmem:[#allocation5] sm:$0x1] %vm135_vm6, %v134_v5 }
 0x3a9   :  { %202 = shalt.err (!%p199_p12)
}
 0x3aa   :  { %s203_s14 = scalar_lea.hbm %s294_s4, 16 }
 0x3ab   :  { %p204_p13 = scmp.ne.s32.totalorder %s294_s4, %s203_s14  ;;  %p207_p0 = scmp.lt.u32.totalorder %s203_s14, %s294_s4 }
 0x3ad   :  { %p209_p1 = pnand %p207_p0, %p204_p13 }
 0x3af   :  { %212 = shalt.err (!%p209_p1)
}
 0x3b0   :  { %146 = dma.vmem_to_hbm [thread:$0]  %s144_s8, 16, %s294_s4, [#allocation4]  }
 0x3b1   :  { %215 = dma.done.wait [#allocation4], 16  }
 0x3b2   :  { %216 = vsyncadd [#allocation4], 4294967280 }
 0x3b3   :  { %150 = vsyncpa [#allocation3], 1 }
 0x3b4   :  { %151 = vsyncpa [#allocation4], 1 }

</bundles_post_ra>
